<compile_context>
chip_gen: v7x
topology: tpu7x:2x2x1
jax: 0.10.0
libtpu: 0.0.40
codegen_flags: <defaults>
</compile_context>

<pallas_src>
import jax
import jax.numpy as jnp
from jax.experimental import pallas as pl
from jax.experimental.pallas import tpu as pltpu

LANE = 128          # pad hidden / action feature dims to full lane width
MAX_TB = 1024       # cap on batch rows per grid step
NEG_MASK = -1e30    # baked into b4's padded lanes -> exp() underflows to exactly 0


def _round_up(n, m):
    return ((n + m - 1) // m) * m


def _pick_tb(batch):
    """Rows per grid step: multiple of 16 (bf16 sublane quantum), capped at MAX_TB,
    and chosen so we get >= 2 grid steps when the batch allows (v7x megacore)."""
    if batch <= 32:
        return _round_up(batch, 16)           # tiny batch: one small step
    tb = _round_up((batch + 1) // 2, 16)      # aim for >= 2 grid steps
    return min(tb, MAX_TB)


def ffn_kernel(x_ref, w1_ref, wpack_ref, bpack_ref, out_ref):
    """One (tb, state_dim) batch tile: 3x (matmul+ReLU) + matmul + softmax."""
    b = bpack_ref[...]                        # (4, 128) f32; b[3] padded lanes = -1e30
    x = x_ref[...].astype(jnp.bfloat16)       # f32 in HBM, cast on the VPU

    # bf16 MXU operands, f32 accumulation, f32 elementwise.
    h = jnp.dot(x, w1_ref[...], preferred_element_type=jnp.float32) + b[0:1, :]
    h = jnp.maximum(h, 0.0)

    h = jnp.dot(h.astype(jnp.bfloat16), wpack_ref[0],
                preferred_element_type=jnp.float32) + b[1:2, :]
    h = jnp.maximum(h, 0.0)

    h = jnp.dot(h.astype(jnp.bfloat16), wpack_ref[1],
                preferred_element_type=jnp.float32) + b[2:3, :]
    h = jnp.maximum(h, 0.0)

    logits = jnp.dot(h.astype(jnp.bfloat16), wpack_ref[2],
                     preferred_element_type=jnp.float32) + b[3:4, :]
    # Padded action lanes carry -1e30 from the baked bias mask -> exp() == 0.

    m = jnp.max(logits, axis=-1, keepdims=True)
    e = jnp.exp(logits - m)
    denom = jnp.sum(e, axis=-1, keepdims=True)
    probs = e * pl.reciprocal(denom, approx=False)   # exact: rows sum to 1
    out_ref[...] = probs.astype(out_ref.dtype)       # bf16 lane-dense store


def init_params(key, state_dim, hidden_size=64, action_dim=3):
    """Deterministic synthetic init (PyTorch-Linear-style); weights stored as (in, out)."""
    dims = [state_dim, hidden_size, hidden_size // 2, hidden_size // 8, action_dim]
    params = {}
    keys = jax.random.split(key, 8)
    for i in range(4):
        fan_in, fan_out = dims[i], dims[i + 1]
        bound = 1.0 / (fan_in ** 0.5)
        params[f"w{i+1}"] = jax.random.uniform(
            keys[2 * i], (fan_in, fan_out), jnp.float32, -bound, bound)
        params[f"b{i+1}"] = jax.random.uniform(
            keys[2 * i + 1], (1, fan_out), jnp.float32, -bound, bound)
    return params


def prepare_params(params):
    """Zero-pad feature dims to 128 lanes, pack weights/biases, bake softmax mask.

    Padded weight columns / bias lanes of layers 1-3 are zero => padded
    activations are exactly zero after ReLU and contribute nothing downstream.
    Layer 4's padded bias lanes are -1e30, so padded logits vanish in softmax.
    """
    state_dim = params["w1"].shape[0]
    action_dim = params["w4"].shape[1]

    def pad_w(w, k_pad, n_pad):
        wp = jnp.zeros((k_pad, n_pad), jnp.float32)
        return wp.at[: w.shape[0], : w.shape[1]].set(w)

    w1p = pad_w(params["w1"], state_dim, LANE).astype(jnp.bfloat16)
    wpack = jnp.stack(
        [pad_w(params["w2"], LANE, LANE),
         pad_w(params["w3"], LANE, LANE),
         pad_w(params["w4"], LANE, LANE)],
        axis=0).astype(jnp.bfloat16)

    bpack = jnp.zeros((4, LANE), jnp.float32)
    for i in range(4):
        b = params[f"b{i+1}"].reshape(-1)
        bpack = bpack.at[i, : b.shape[0]].set(b)
    bpack = bpack.at[3, action_dim:].set(NEG_MASK)   # baked action-lane mask

    return {"w1": w1p, "wpack": wpack, "bpack": bpack,
            "state_dim": int(state_dim), "action_dim": int(action_dim)}


def ffn_forward(x, prepared):
    """x: (batch, state_dim) f32. Returns (batch, action_dim) f32 softmax."""
    batch, state_dim = x.shape
    assert state_dim == prepared["state_dim"]
    action_dim = prepared["action_dim"]

    tb = _pick_tb(batch)
    padded_batch = _round_up(batch, tb)
    xp = x.astype(jnp.float32)
    if padded_batch != batch:
        xp = jnp.pad(xp, ((0, padded_batch - batch), (0, 0)))

    w1, wpack, bpack = prepared["w1"], prepared["wpack"], prepared["bpack"]

    out = pl.pallas_call(
        ffn_kernel,
        out_shape=jax.ShapeDtypeStruct((padded_batch, LANE), jnp.bfloat16),
        grid=(padded_batch // tb,),
        in_specs=[
            pl.BlockSpec((tb, state_dim), lambda i: (i, 0)),   # streamed f32 input
            pl.BlockSpec(w1.shape, lambda i: (0, 0)),          # VMEM-resident weights
            pl.BlockSpec(wpack.shape, lambda i: (0, 0, 0)),
            pl.BlockSpec(bpack.shape, lambda i: (0, 0)),
        ],
        out_specs=pl.BlockSpec((tb, LANE), lambda i: (i, 0)),
        compiler_params=pltpu.CompilerParams(
            dimension_semantics=("parallel",)),                # megacore-shard on v7x
    )(xp, w1, wpack, bpack)

    return out[:batch, :action_dim].astype(jnp.float32)


def ffn_reference(x, params):
    """Pure f32 reference (matches the PyTorch module)."""
    h = jnp.maximum(x @ params["w1"] + params["b1"], 0.0)
    h = jnp.maximum(h @ params["w2"] + params["b2"], 0.0)
    h = jnp.maximum(h @ params["w3"] + params["b3"], 0.0)
    logits = h @ params["w4"] + params["b4"]
    return jax.nn.softmax(logits, axis=-1)


def ffn_reference_bf16(x, params):
    """Reference with the same bf16-operand / f32-accumulate matmuls as the kernel."""
    def mm(a, w):
        return jnp.dot(a.astype(jnp.bfloat16), w.astype(jnp.bfloat16),
                       preferred_element_type=jnp.float32)
    h = jnp.maximum(mm(x, params["w1"]) + params["b1"], 0.0)
    h = jnp.maximum(mm(h, params["w2"]) + params["b2"], 0.0)
    h = jnp.maximum(mm(h, params["w3"]) + params["b3"], 0.0)
    logits = mm(h, params["w4"]) + params["b4"]
    return jax.nn.softmax(logits, axis=-1)


def _check(out, x, params, batch, action_dim):
    ref_f32 = ffn_reference(x, params)
    ref_bf16 = ffn_reference_bf16(x, params)
    assert out.shape == (batch, action_dim)
    # bf16 MXU operands + bf16 output store: tight vs the matched bf16 reference,
    # loose vs the pure-f32 reference.
    assert jnp.allclose(out, ref_bf16, atol=1e-2, rtol=1e-2)
    assert jnp.allclose(out, ref_f32, atol=3e-2, rtol=3e-2)
    # Rows of a softmax sum to ~1 (bf16 output rounding => small slack).
    assert jnp.allclose(jnp.sum(out, axis=-1), 1.0, atol=2e-2)


if __name__ == "__main__":
    key = jax.random.PRNGKey(0)
    k_param, k_x1, k_x2 = jax.random.split(key, 3)

    state_dim = 16
    hidden_size = 64
    action_dim = 3

    params = init_params(k_param, state_dim, hidden_size, action_dim)
    prepared = prepare_params(params)

    # Small batch: single 16-row grid step (no 16x padding to 128 anymore).
    batch = 8
    x = jax.random.normal(k_x1, (batch, state_dim), jnp.float32)
    out = ffn_forward(x, prepared)
    jax.block_until_ready(out)
    _check(out, x, params, batch, action_dim)

    # Non-multiple batch: exercises multi-step grid (>=2 steps) + pad/slice path.
    batch2 = 100
    x2 = jax.random.normal(k_x2, (batch2, state_dim), jnp.float32)
    out2 = ffn_forward(x2, prepared)
    jax.block_until_ready(out2)
    _check(out2, x2, params, batch2, action_dim)

    print("KERNEL_OK")
</pallas_src>

<mosaic_0001>
module attributes {stable_mosaic.version = 11 : i64} {
  func.func @ffn_kernel(%arg0: i32, %arg1: memref<16x16xf32, #tpu.memory_space<vmem>>, %arg2: memref<16x128xbf16, #tpu.memory_space<vmem>>, %arg3: memref<3x128x128xbf16, #tpu.memory_space<vmem>>, %arg4: memref<4x128xf32, #tpu.memory_space<vmem>>, %arg5: memref<16x128xbf16, #tpu.memory_space<vmem>>) attributes {dimension_semantics = [#tpu.dimension_semantics<parallel>], iteration_bounds = array<i64: 1>, scalar_prefetch = 0 : i64, scratch_operands = 0 : i64, tpu.core_type = #tpu.core_type<tc>, window_params = [{transform_indices = @transform_0, window_bounds = array<i64: 16, 16>}, {pipeline_mode = #tpu.pipeline_mode<synchronous>, transform_indices = @transform_1, window_bounds = array<i64: 16, 128>}, {pipeline_mode = #tpu.pipeline_mode<synchronous>, transform_indices = @transform_2, window_bounds = array<i64: 3, 128, 128>}, {pipeline_mode = #tpu.pipeline_mode<synchronous>, transform_indices = @transform_3, window_bounds = array<i64: 4, 128>}, {transform_indices = @transform_4, window_bounds = array<i64: 16, 128>}]} {
    %c0 = arith.constant 0 : index
    %c0_0 = arith.constant 0 : index
    %0 = vector.load %arg4[%c0, %c0_0] : memref<4x128xf32, #tpu.memory_space<vmem>>, vector<4x128xf32>
    %c0_1 = arith.constant 0 : index
    %c0_2 = arith.constant 0 : index
    %1 = vector.load %arg1[%c0_1, %c0_2] : memref<16x16xf32, #tpu.memory_space<vmem>>, vector<16x16xf32>
    %2 = arith.truncf %1 : vector<16x16xf32> to vector<16x16xbf16>
    %c0_3 = arith.constant 0 : index
    %c0_4 = arith.constant 0 : index
    %3 = vector.load %arg2[%c0_3, %c0_4] : memref<16x128xbf16, #tpu.memory_space<vmem>>, vector<16x128xbf16>
    %cst = arith.constant dense<0.000000e+00> : vector<16x128xf32>
    %4 = tpu.matmul %2, %3, %cst {dimension_numbers = #tpu.dot_dimension_numbers<[1], [0], [0], [1], [0, 0, 1, 1], [], []>} : vector<16x16xbf16>, vector<16x128xbf16>, vector<16x128xf32> -> vector<16x128xf32>
    %5 = vector.extract_strided_slice %0 {offsets = [0, 0], sizes = [1, 128], strides = [1, 1]} : vector<4x128xf32> to vector<1x128xf32>
    %6 = vector.broadcast %5 : vector<1x128xf32> to vector<16x128xf32>
    %7 = arith.addf %4, %6 : vector<16x128xf32>
    %cst_5 = arith.constant 0.000000e+00 : f32
    %8 = vector.broadcast %cst_5 : f32 to vector<16x128xf32>
    %9 = arith.maximumf %7, %8 : vector<16x128xf32>
    %10 = arith.truncf %9 : vector<16x128xf32> to vector<16x128xbf16>
    %c0_6 = arith.constant 0 : index
    %c0_7 = arith.constant 0 : index
    %c0_8 = arith.constant 0 : index
    %11 = vector.load %arg3[%c0_6, %c0_7, %c0_8] : memref<3x128x128xbf16, #tpu.memory_space<vmem>>, vector<1x128x128xbf16>
    %12 = vector.shape_cast %11 : vector<1x128x128xbf16> to vector<128x128xbf16>
    %cst_9 = arith.constant dense<0.000000e+00> : vector<16x128xf32>
    %13 = tpu.matmul %10, %12, %cst_9 {dimension_numbers = #tpu.dot_dimension_numbers<[1], [0], [0], [1], [0, 0, 1, 1], [], []>} : vector<16x128xbf16>, vector<128x128xbf16>, vector<16x128xf32> -> vector<16x128xf32>
    %14 = vector.extract_strided_slice %0 {offsets = [1, 0], sizes = [1, 128], strides = [1, 1]} : vector<4x128xf32> to vector<1x128xf32>
    %15 = vector.broadcast %14 : vector<1x128xf32> to vector<16x128xf32>
    %16 = arith.addf %13, %15 : vector<16x128xf32>
    %cst_10 = arith.constant 0.000000e+00 : f32
    %17 = vector.broadcast %cst_10 : f32 to vector<16x128xf32>
    %18 = arith.maximumf %16, %17 : vector<16x128xf32>
    %19 = arith.truncf %18 : vector<16x128xf32> to vector<16x128xbf16>
    %c1 = arith.constant 1 : index
    %c0_11 = arith.constant 0 : index
    %c0_12 = arith.constant 0 : index
    %20 = vector.load %arg3[%c1, %c0_11, %c0_12] : memref<3x128x128xbf16, #tpu.memory_space<vmem>>, vector<1x128x128xbf16>
    %21 = vector.shape_cast %20 : vector<1x128x128xbf16> to vector<128x128xbf16>
    %cst_13 = arith.constant dense<0.000000e+00> : vector<16x128xf32>
    %22 = tpu.matmul %19, %21, %cst_13 {dimension_numbers = #tpu.dot_dimension_numbers<[1], [0], [0], [1], [0, 0, 1, 1], [], []>} : vector<16x128xbf16>, vector<128x128xbf16>, vector<16x128xf32> -> vector<16x128xf32>
    %23 = vector.extract_strided_slice %0 {offsets = [2, 0], sizes = [1, 128], strides = [1, 1]} : vector<4x128xf32> to vector<1x128xf32>
    %24 = vector.broadcast %23 : vector<1x128xf32> to vector<16x128xf32>
    %25 = arith.addf %22, %24 : vector<16x128xf32>
    %cst_14 = arith.constant 0.000000e+00 : f32
    %26 = vector.broadcast %cst_14 : f32 to vector<16x128xf32>
    %27 = arith.maximumf %25, %26 : vector<16x128xf32>
    %28 = arith.truncf %27 : vector<16x128xf32> to vector<16x128xbf16>
    %c2 = arith.constant 2 : index
    %c0_15 = arith.constant 0 : index
    %c0_16 = arith.constant 0 : index
    %29 = vector.load %arg3[%c2, %c0_15, %c0_16] : memref<3x128x128xbf16, #tpu.memory_space<vmem>>, vector<1x128x128xbf16>
    %30 = vector.shape_cast %29 : vector<1x128x128xbf16> to vector<128x128xbf16>
    %cst_17 = arith.constant dense<0.000000e+00> : vector<16x128xf32>
    %31 = tpu.matmul %28, %30, %cst_17 {dimension_numbers = #tpu.dot_dimension_numbers<[1], [0], [0], [1], [0, 0, 1, 1], [], []>} : vector<16x128xbf16>, vector<128x128xbf16>, vector<16x128xf32> -> vector<16x128xf32>
    %32 = vector.extract_strided_slice %0 {offsets = [3, 0], sizes = [1, 128], strides = [1, 1]} : vector<4x128xf32> to vector<1x128xf32>
    %33 = vector.broadcast %32 : vector<1x128xf32> to vector<16x128xf32>
    %34 = arith.addf %31, %33 : vector<16x128xf32>
    %cst_18 = arith.constant dense<0xFF800000> : vector<16xf32>
    %35 = vector.multi_reduction <maximumf>, %34, %cst_18 [1] : vector<16x128xf32> to vector<16xf32>
    %36 = vector.shape_cast %35 : vector<16xf32> to vector<16x1xf32>
    %37 = vector.broadcast %36 : vector<16x1xf32> to vector<16x128xf32>
    %38 = arith.subf %34, %37 : vector<16x128xf32>
    %39 = math.exp %38 : vector<16x128xf32>
    %cst_19 = arith.constant dense<0.000000e+00> : vector<16xf32>
    %40 = vector.multi_reduction <add>, %39, %cst_19 [1] : vector<16x128xf32> to vector<16xf32>
    %41 = vector.shape_cast %40 : vector<16xf32> to vector<16x1xf32>
    %42 = tpu.reciprocal %41 : vector<16x1xf32> -> vector<16x1xf32>
    %43 = vector.broadcast %42 : vector<16x1xf32> to vector<16x128xf32>
    %44 = arith.mulf %39, %43 : vector<16x128xf32>
    %45 = arith.truncf %44 : vector<16x128xf32> to vector<16x128xbf16>
    %c0_20 = arith.constant 0 : index
    %c0_21 = arith.constant 0 : index
    %46 = vector.load %arg5[%c0_20, %c0_21] : memref<16x128xbf16, #tpu.memory_space<vmem>>, vector<16x128xbf16>
    tpu.vector_store %arg5[%c0_20, %c0_21], %45 {strides = array<i32>} : memref<16x128xbf16, #tpu.memory_space<vmem>>, vector<16x128xbf16>,
    return
  }
  func.func @transform_0(%arg0: i32) -> (i32, i32) {
    %c0_i32 = arith.constant 0 : i32
    %c0_i32_0 = arith.constant 0 : i32
    return %arg0, %c0_i32 : i32, i32
  }
  func.func @transform_1(%arg0: i32) -> (i32, i32) {
    %c0_i32 = arith.constant 0 : i32
    %c0_i32_0 = arith.constant 0 : i32
    %c0_i32_1 = arith.constant 0 : i32
    return %c0_i32, %c0_i32_0 : i32, i32
  }
  func.func @transform_2(%arg0: i32) -> (i32, i32, i32) {
    %c0_i32 = arith.constant 0 : i32
    %c0_i32_0 = arith.constant 0 : i32
    %c0_i32_1 = arith.constant 0 : i32
    %c0_i32_2 = arith.constant 0 : i32
    return %c0_i32, %c0_i32_0, %c0_i32_1 : i32, i32, i32
  }
  func.func @transform_3(%arg0: i32) -> (i32, i32) {
    %c0_i32 = arith.constant 0 : i32
    %c0_i32_0 = arith.constant 0 : i32
    %c0_i32_1 = arith.constant 0 : i32
    return %c0_i32, %c0_i32_0 : i32, i32
  }
  func.func @transform_4(%arg0: i32) -> (i32, i32) {
    %c0_i32 = arith.constant 0 : i32
    %c0_i32_0 = arith.constant 0 : i32
    return %arg0, %c0_i32 : i32, i32
  }
}

</mosaic_0001>

<bundles_post_ra>
// kernel: tpu_custom_call.1
= control target key start
LH: loop header
LB: loop body
LE: loop exit
PB: predicated region body
PF: predicated region fallthrough
CT: control target
= control target key end

     0   :  { %9 = vsyncpa [#allocation3], 0  ;;  %s912_s0 = inlined_call_operand.hbm [shape: f32[16,16], index: 0, kind: input, shape index: {}]   ;;  %s913_s1 = inlined_call_operand.hbm [shape: bf16[16,128], index: 1, kind: input, shape index: {}]   ;;  %s914_s2 = inlined_call_operand.hbm [shape: bf16[3,128,128], index: 2, kind: input, shape index: {}]   ;;  %s915_s3 = inlined_call_operand.vmem [shape: f32[4,128], index: 3, kind: input, shape index: {}]   ;;  %s916_s4 = inlined_call_operand.hbm [shape: bf16[16,128], index: 4, kind: output, shape index: {}]  }
   0x1   :  { %10 = vsyncpa [#allocation6], 0 }
   0x2   :  { %11 = vsyncpa [#allocation4], 0  ;;  %s772_s15 = smov [#allocation5]   ;;  %s678_s19 = scalar_lea.hbm %s913_s1, 128 }
   0x3   :  { %s29_s16 = sshll.u32 %s772_s15, 4  ;;  %p679_p0 = scmp.ne.s32.totalorder %s913_s1, %s678_s19  ;;  %s30_s16 = int_to_ptr.vmem [resolvable:$true] %s29_s16 }
   0x4   :  { %p682_p1 = scmp.lt.u32.totalorder %s678_s19, %s913_s1 }
   0x6   :  { %p684_p2 = pnand %p682_p1, %p679_p0 }
   0x8   :  { %687 = shalt.err (!%p684_p2)
}
   0x9   :  { %s688_s24 = scalar_lea.vmem %s30_s16, 128  ;;  %p693_p4 = scmp.lt.s32.totalorder %s30_s16, %s30_s16 }
   0xa   :  { %p689_p3 = scmp.ne.s32.totalorder %s30_s16, %s688_s24  ;;  %p694_p5 = scmp.lt.s32.totalorder %s688_s24, %s688_s24 }
   0xc   :  { %p695_p6 = por %p694_p5, %p693_p4 }
   0xe   :  { %p696_p7 = pnand %p695_p6, %p689_p3 }
  0x10   :  { %699 = shalt.err (!%p696_p7)
}
  0x11   :  { %s773_s25 = smov 64   ;;  %s774_s26 = smov 4  }
  0x12   :  { %35 = dma.hbm_to_vmem [thread:$0]  %s913_s1, 128, %s30_s16, [#allocation6], %s773_s25, %s773_s25, %s774_s26  }
  0x13   :  { %s775_s29 = smov [#allocation2]   ;;  %s700_s7 = scalar_lea.hbm %s912_s0, 256 }
  0x14   :  { %s17_s30 = sshll.u32 %s775_s29, 4  ;;  %p701_p8 = scmp.ne.s32.totalorder %s912_s0, %s700_s7  ;;  %s18_s30 = int_to_ptr.vmem [resolvable:$true] %s17_s30 }
  0x15   :  { %p704_p9 = scmp.lt.u32.totalorder %s700_s7, %s912_s0 }
  0x17   :  { %p706_p10 = pnand %p704_p9, %p701_p8 }
  0x19   :  { %709 = shalt.err (!%p706_p10)
}
  0x1a   :  { %s710_s12 = scalar_lea.vmem %s18_s30, 256  ;;  %p715_p12 = scmp.lt.s32.totalorder %s18_s30, %s18_s30 }
  0x1b   :  { %p711_p11 = scmp.ne.s32.totalorder %s18_s30, %s710_s12  ;;  %p716_p13 = scmp.lt.s32.totalorder %s710_s12, %s710_s12 }
  0x1d   :  { %p717_p0 = por %p716_p13, %p715_p12 }
  0x1f   :  { %p718_p1 = pnand %p717_p0, %p711_p11 }
  0x21   :  { %721 = shalt.err (!%p718_p1)
}
  0x22   :  { %s776_s1 = smov 128   ;;  %s777_s13 = smov 8  }
  0x23   :  { %23 = dma.hbm_to_vmem [thread:$0]  %s912_s0, 256, %s18_s30, [#allocation3], %s776_s1, %s776_s1, %s777_s13  }
  0x24   :  { %s778_s16 = smov [#allocation7]   ;;  %s722_s20 = scalar_lea.hbm %s914_s2, 3072 }
  0x25   :  { %s41_s17 = sshll.u32 %s778_s16, 4  ;;  %p723_p2 = scmp.ne.s32.totalorder %s914_s2, %s722_s20  ;;  %s42_s17 = int_to_ptr.vmem [resolvable:$true] %s41_s17 }
  0x26   :  { %p726_p3 = scmp.lt.u32.totalorder %s722_s20, %s914_s2 }
  0x28   :  { %p728_p4 = pnand %p726_p3, %p723_p2 }
  0x2a   :  { %731 = shalt.err (!%p728_p4)
}
  0x2b   :  { %s732_s27 = scalar_lea.vmem %s42_s17, 3072  ;;  %p737_p6 = scmp.lt.s32.totalorder %s42_s17, %s42_s17 }
  0x2c   :  { %p733_p5 = scmp.ne.s32.totalorder %s42_s17, %s732_s27  ;;  %p738_p7 = scmp.lt.s32.totalorder %s732_s27, %s732_s27 }
  0x2e   :  { %p739_p8 = por %p738_p7, %p737_p6 }
  0x30   :  { %p740_p9 = pnand %p739_p8, %p733_p5 }
  0x32   :  { %743 = shalt.err (!%p740_p9)
}
  0x33   :  { %47 = dma.hbm_to_vmem [thread:$0]  %s914_s2, 3072, %s42_s17, [#allocation6], %s773_s25, %s773_s25, %s774_s26  }
  0x34   :  { %766 = dma.done.wait [#allocation3], 256  }
  0x35   :  { %767 = vsyncadd [#allocation3], 4294967040 }
  0x36   :  { %768 = dma.done.wait [#allocation6], 3200  }
  0x37   :  { %769 = vsyncadd [#allocation6], 4294964096  ;;  %v779_v0 = vmov 0.0   ;;  %vm780_vm0 = vmmov 0   ;;  %v645_v1 = vld [vmem:[#allocation5] sm:$0xff]   ;;  %v61_v2 = vld [vmem:[#allocation2] sm:$0xff]  ;;  %v66_v19 = vlaneseq }
  0x38   :  { %569 = vmatprep.subr.bf16.mxu0 %v779_v0  ;;  %571 = vmatprep.mubr.msk.bf16.mxu0 %vm780_vm0, %v779_v0  ;;  %v62_v3 = vld [vmem:[#allocation2 + $0x8] sm:$0xff]  ;;  %vm76_vm1 = vcmask 130048   ;;  %v646_v5 = vld [vmem:[#allocation7] sm:$0xff]   ;;  %v647_v6 = vld [vmem:[#allocation7 + $0x8] sm:$0xff]  }
  0x39   :  { %575 = vmatprep.subr.bf16.mxu1 %v779_v0  ;;  %591 = vmatprep.mubr.msk.bf16.mxu1 %vm780_vm0, %v779_v0  ;;  %v63_v4 = vpack.c.bf16 %v62_v3, %v61_v2  ;;  %v648_v7 = vld [vmem:[#allocation7 + $0x10] sm:$0xff]   ;;  %v649_v8 = vld [vmem:[#allocation7 + $0x18] sm:$0xff]   ;;  %v650_v9 = vld [vmem:[#allocation7 + $0x20] sm:$0xff]   ;;  %v872_v20 = vshrl.u32 %v66_v19, 7 }
  0x3a   :  { %570 = vmatpush3.bf16.msra.mxu0 %v645_v1  ;;  %576 = vmatpush3.bf16.msra.mxu1 %v646_v5  ;;  %v651_v10 = vld [vmem:[#allocation7 + $0x28] sm:$0xff]   ;;  %v652_v11 = vld [vmem:[#allocation7 + $0x30] sm:$0xff]   ;;  %v653_v12 = vld [vmem:[#allocation7 + $0x38] sm:$0xff]  }
  0x3b   :  { %595 = vmatprep.subr.bf16.mxu0 %v779_v0  ;;  %577 = vmatprep.subr.bf16.mxu1 %v779_v0  ;;  %v654_v13 = vld [vmem:[#allocation7 + $0x40] sm:$0xff]   ;;  %v655_v14 = vld [vmem:[#allocation7 + $0x48] sm:$0xff]   ;;  %v656_v15 = vld [vmem:[#allocation7 + $0x50] sm:$0xff]   ;;  %v68_v21 = vsub.s32 0, %v872_v20  ;;  %v142_v41 = vsub.s32 1, %v872_v20  ;;  %v255_v54 = vsub.s32 2, %v872_v20 }
  0x3c   :  { %v657_v16 = vld [vmem:[#allocation7 + $0x58] sm:$0xff]   ;;  %v658_v17 = vld [vmem:[#allocation7 + $0x60] sm:$0xff]   ;;  %v659_v18 = vld [vmem:[#allocation7 + $0x68] sm:$0xff]   ;;  %v368_v2 = vsub.s32 3, %v872_v20 }
  0x3d   :  { %572 = vmatmul.mubr.msk.bf16.vlgmr.msra.gmra.mrb[0].mxu0 %vm76_vm1, %v63_v4  ;;  %v878_v22 = vld [vmem:[%s915_s3] sm:$0xf]  ;;  %v660_v33 = vld [vmem:[#allocation7 + $0x70] sm:$0xff]   ;;  %v661_v34 = vld [vmem:[#allocation7 + $0x78] sm:$0xff]   ;;  %s781_s3 = smov [#allocation8]  }
  0x3e   :  { %611 = vmatprep.mubr.msk.bf16.mxu0 %vm780_vm0, %v779_v0  ;;  %578 = vmatpush3.bf16.msra.mxu1 %v647_v6  ;;  %v69_v23 = vrot.slane %v878_v22, %v68_v21  ;;  %v662_v35 = vld [vmem:[#allocation7 + $0x80] sm:$0xff]   ;;  %v663_v36 = vld [vmem:[#allocation7 + $0x88] sm:$0xff]   ;;  %v664_v37 = vld [vmem:[#allocation7 + $0x90] sm:$0xff]   ;;  %v143_v42 = vrot.slane %v878_v22, %v142_v41  ;;  %v256_v55 = vrot.slane %v878_v22, %v255_v54  ;;  %s492_s30 = sshll.u32 %s781_s3, 4  ;;  %s493_s30 = int_to_ptr.vmem [resolvable:$true] %s492_s30 }
  0x3f   :  { %579 = vmatprep.subr.bf16.mxu1 %v779_v0  ;;  %596 = vmatpush3.bf16.msra.mxu0 %v654_v13  ;;  %v665_v38 = vld [vmem:[#allocation7 + $0x98] sm:$0xff]   ;;  %v666_v39 = vld [vmem:[#allocation7 + $0xa0] sm:$0xff]   ;;  %v667_v40 = vld [vmem:[#allocation7 + $0xa8] sm:$0xff]   ;;  %s744_s5 = scalar_lea.vmem %s493_s30, 128  ;;  %p749_p11 = scmp.lt.s32.totalorder %s493_s30, %s493_s30 }
  0x40   :  { %597 = vmatprep.subr.bf16.mxu0 %v779_v0  ;;  %v668_v52 = vld [vmem:[#allocation7 + $0xb0] sm:$0xff]   ;;  %v669_v53 = vld [vmem:[#allocation7 + $0xb8] sm:$0xff]   ;;  %p745_p10 = scmp.ne.s32.totalorder %s493_s30, %s744_s5  ;;  %p750_p12 = scmp.lt.s32.totalorder %s744_s5, %s744_s5 }
  0x42   :  { %580 = vmatpush3.bf16.msra.mxu1 %v648_v7  ;;  %p751_p13 = por %p750_p12, %p749_p11 }
  0x43   :  { %581 = vmatprep.subr.bf16.mxu1 %v779_v0  ;;  %598 = vmatpush3.bf16.msra.mxu0 %v655_v14 }
  0x44   :  { %599 = vmatprep.subr.bf16.mxu0 %v779_v0  ;;  %p752_p0 = pnand %p751_p13, %p745_p10 }
  0x46   :  { %582 = vmatpush3.bf16.msra.mxu1 %v649_v8 }
  0x47   :  { %583 = vmatprep.subr.bf16.mxu1 %v779_v0  ;;  %600 = vmatpush3.bf16.msra.mxu0 %v656_v15 }
  0x48   :  { %601 = vmatprep.subr.bf16.mxu0 %v779_v0 }
  0x4a   :  { %584 = vmatpush3.bf16.msra.mxu1 %v650_v9 }
  0x4b   :  { %585 = vmatprep.subr.bf16.mxu1 %v779_v0  ;;  %602 = vmatpush3.bf16.msra.mxu0 %v657_v16 }
  0x4c   :  { %603 = vmatprep.subr.bf16.mxu0 %v779_v0 }
  0x4e   :  { %586 = vmatpush3.bf16.msra.mxu1 %v651_v10 }
  0x4f   :  { %587 = vmatprep.subr.bf16.mxu1 %v779_v0  ;;  %604 = vmatpush3.bf16.msra.mxu0 %v658_v17 }
  0x50   :  { %605 = vmatprep.subr.bf16.mxu0 %v779_v0 }
  0x52   :  { %588 = vmatpush3.bf16.msra.mxu1 %v652_v11 }
  0x53   :  { %589 = vmatprep.subr.bf16.mxu1 %v779_v0  ;;  %606 = vmatpush3.bf16.msra.mxu0 %v659_v18 }
  0x54   :  { %607 = vmatprep.subr.bf16.mxu0 %v779_v0 }
  0x56   :  { %590 = vmatpush3.bf16.msra.mxu1 %v653_v12 }
  0x57   :  { %615 = vmatprep.subr.bf16.mxu1 %v779_v0  ;;  %608 = vmatpush3.bf16.msra.mxu0 %v660_v33 }
  0x58   :  { %609 = vmatprep.subr.bf16.mxu0 %v779_v0 }
  0x5b   :  { %610 = vmatpush3.bf16.msra.mxu0 %v661_v34 }
 0x110   :  { %v114_v24 = vpop.f32.mrb[0].mxu0 }
 0x111   :  { %v115_v25 = vadd.f32 %v114_v24, %v69_v23  ;;  %v573_v26 = vpop.f32.mrb[1].mxu0 }
 0x112   :  { %v117_v27 = vpop.f32.mrb[2].mxu0 }
 0x113   :  { %v118_v28 = vadd.f32 %v117_v27, %v69_v23  ;;  %v574_v29 = vpop.f32.mrb[3].mxu0  ;;  %v121_v30 = vmax.f32 %v115_v25, 0.0 }
 0x115   :  { %v122_v31 = vmax.f32 %v118_v28, 0.0 }
 0x117   :  { %v123_v32 = vpack.c.bf16 %v122_v31, %v121_v30 }
 0x119   :  { %592 = vmatmul.mubr.bf16.vlgmr.msra.gmra.mrb[0].mxu1 %v123_v32 }
 0x11a   :  { %631 = vmatprep.mubr.msk.bf16.mxu1 %vm780_vm0, %v779_v0  ;;  %616 = vmatpush3.bf16.msra.mxu1 %v662_v35 }
 0x11b   :  { %617 = vmatprep.subr.bf16.mxu1 %v779_v0 }
 0x11e   :  { %618 = vmatpush3.bf16.msra.mxu1 %v663_v36 }
 0x11f   :  { %619 = vmatprep.subr.bf16.mxu1 %v779_v0 }
 0x122   :  { %620 = vmatpush3.bf16.msra.mxu1 %v664_v37 }
 0x123   :  { %621 = vmatprep.subr.bf16.mxu1 %v779_v0 }
 0x126   :  { %622 = vmatpush3.bf16.msra.mxu1 %v665_v38 }
 0x127   :  { %623 = vmatprep.subr.bf16.mxu1 %v779_v0 }
 0x12a   :  { %624 = vmatpush3.bf16.msra.mxu1 %v666_v39 }
 0x12b   :  { %625 = vmatprep.subr.bf16.mxu1 %v779_v0 }
 0x12e   :  { %626 = vmatpush3.bf16.msra.mxu1 %v667_v40 }
 0x12f   :  { %627 = vmatprep.subr.bf16.mxu1 %v779_v0 }
 0x132   :  { %628 = vmatpush3.bf16.msra.mxu1 %v668_v52 }
 0x133   :  { %629 = vmatprep.subr.bf16.mxu1 %v779_v0  ;;  %v369_v0 = vrot.slane %v878_v22, %v368_v2 }
 0x136   :  { %630 = vmatpush3.bf16.msra.mxu1 %v669_v53 }
 0x1ec   :  { %v226_v43 = vpop.f32.mrb[0].mxu1 }
 0x1ed   :  { %v227_v44 = vadd.f32 %v226_v43, %v143_v42  ;;  %v593_v45 = vpop.f32.mrb[1].mxu1 }
 0x1ee   :  { %v229_v46 = vpop.f32.mrb[2].mxu1 }
 0x1ef   :  { %v230_v47 = vadd.f32 %v229_v46, %v143_v42  ;;  %v594_v48 = vpop.f32.mrb[3].mxu1  ;;  %v233_v49 = vmax.f32 %v227_v44, 0.0 }
 0x1f1   :  { %v234_v50 = vmax.f32 %v230_v47, 0.0 }
 0x1f3   :  { %v235_v51 = vpack.c.bf16 %v234_v50, %v233_v49 }
 0x1f5   :  { %612 = vmatmul.mubr.bf16.vlgmr.msra.gmra.mrb[4].mxu0 %v235_v51 }
 0x2c8   :  { %v339_v56 = vpop.f32.mrb[4].mxu0 }
 0x2c9   :  { %v340_v57 = vadd.f32 %v339_v56, %v256_v55  ;;  %v613_v58 = vpop.f32.mrb[5].mxu0 }
 0x2ca   :  { %v342_v59 = vpop.f32.mrb[6].mxu0 }
 0x2cb   :  { %v343_v60 = vadd.f32 %v342_v59, %v256_v55  ;;  %v614_v61 = vpop.f32.mrb[7].mxu0  ;;  %v346_v62 = vmax.f32 %v340_v57, 0.0 }
 0x2cd   :  { %v347_v63 = vmax.f32 %v343_v60, 0.0 }
 0x2cf   :  { %v348_v1 = vpack.c.bf16 %v347_v63, %v346_v62 }
 0x2d1   :  { %632 = vmatmul.mubr.bf16.vlgmr.msra.gmra.mrb[4].mxu1 %v348_v1 }
 0x3a4   :  { %v452_v3 = vpop.f32.mrb[4].mxu1 }
 0x3a5   :  { %v453_v4 = vadd.f32 %v452_v3, %v369_v0  ;;  %v633_v5 = vpop.f32.mrb[5].mxu1 }
 0x3a6   :  { %v455_v6 = vpop.f32.mrb[6].mxu1 }
 0x3a7   :  { %459 = vmax.xlane.f32.xlu0 %v453_v4  ;;  %v634_v7 = vpop.f32.mrb[7].mxu1  ;;  %v456_v8 = vadd.f32 %v455_v6, %v369_v0 }
 0x3ab   :  { %461 = vmax.xlane.f32.xlu0 %v456_v8 }
 0x434   :  { %v460_v9 = vpop.xlane.xlu0 %459 }
 0x435   :  { %v463_v10 = vsub.f32 %v453_v4, %v460_v9 }
 0x437   :  { %v465_v11 = vmul.f32 1.442695, %v463_v10 }
 0x438   :  { %v462_v12 = vpop.xlane.xlu0 %461 }
 0x439   :  { %670 = vpow2.f32 %v465_v11  ;;  %v464_v13 = vsub.f32 %v456_v8, %v462_v12 }
 0x43b   :  { %v467_v14 = vmul.f32 1.442695, %v464_v13 }
 0x43d   :  { %672 = vpow2.f32 %v467_v14 }
 0x443   :  { %v671_v15 = vpop.eup %670 }
 0x444   :  { %469 = vadd.xlane.f32.xlu1 %v671_v15 }
 0x447   :  { %v673_v16 = vpop.eup %672 }
 0x448   :  { %471 = vadd.xlane.f32.xlu1 %v673_v16 }
 0x4d1   :  { %v470_v17 = vpop.xlane.xlu1 %469 }
 0x4d2   :  { %674 = vrcp.f32 %v470_v17 }
 0x4d5   :  { %v472_v18 = vpop.xlane.xlu1 %471 }
 0x4d6   :  { %676 = vrcp.f32 %v472_v18 }
 0x4dc   :  { %v675_v19 = vpop.eup %674 }
 0x4dd   :  { %v475_v21 = vmul.f32 %v675_v19, %v671_v15 }
 0x4e0   :  { %v677_v20 = vpop.eup %676 }
 0x4e1   :  { %v476_v22 = vmul.f32 %v677_v20, %v673_v16 }
 0x4e3   :  { %v538_v23 = vpack.c.bf16 %v476_v22, %v475_v21 }
 0x4e5   :  { %539 = vst [vmem:[#allocation8] sm:$0xff] %v538_v23  }
 0x4e6   :  { %755 = shalt.err (!%p752_p0)
}
 0x4e7   :  { %s756_s8 = scalar_lea.hbm %s916_s4, 128 }
 0x4e8   :  { %p757_p1 = scmp.ne.s32.totalorder %s916_s4, %s756_s8  ;;  %p760_p2 = scmp.lt.u32.totalorder %s756_s8, %s916_s4 }
 0x4ea   :  { %p762_p3 = pnand %p760_p2, %p757_p1 }
 0x4ec   :  { %765 = shalt.err (!%p762_p3)
}
 0x4ed   :  { %498 = dma.vmem_to_hbm [thread:$0]  %s493_s30, 128, %s916_s4, [#allocation4], %s773_s25, %s773_s25, %s774_s26  }
 0x4ee   :  { %770 = dma.done.wait [#allocation4], 128  }
 0x4ef   :  { %771 = vsyncadd [#allocation4], 4294967168 }
 0x4f0   :  { %502 = vsyncpa [#allocation3], 1 }
 0x4f1   :  { %503 = vsyncpa [#allocation6], 1 }
 0x4f2   :  { %504 = vsyncpa [#allocation4], 1 }

</bundles_post_ra>
